<compile_context>
chip_gen: v7x
topology: tpu7x:2x2x1
jax: 0.10.0
libtpu: 0.0.40
codegen_flags: <defaults>
</compile_context>

<pallas_src>
import math

import jax
import jax.numpy as jnp
from jax.experimental import pallas as pl
from jax.experimental.pallas import tpu as pltpu


def _ceil_to(a: int, m: int) -> int:
    return -(-a // m) * m


def _sublane_multiple(itemsize: int) -> int:
    # f32 -> 8, bf16 -> 16, int8/fp8 -> 32 (full vreg sublane occupancy).
    return max(8, 32 // max(itemsize, 1))


def _pack_factor(w1: int, w2: int, rows: int) -> int:
    """How many consecutive rows to pack into one output lane-row.

    Picks the largest power-of-two k (capped at 16 to bound the number of
    lane-concat pieces) such that k divides `rows` and k*(w1+w2) is as close
    as possible to a multiple of 128 (exactly a multiple when rows allow it).
    """
    wsum = w1 + w2
    if wsum % 128 == 0 or rows <= 1:
        return 1
    k0 = 128 // math.gcd(wsum, 128)     # power of two in [2, 128]
    k = math.gcd(k0, rows)              # largest power of two dividing both
    return max(1, min(k, 16))


def _concat_last_kernel(w1: int, w2: int, k: int):
    """Packed output row p = [x_{pk} | s_{pk} | x_{pk+1} | s_{pk+1} | ...]."""

    def kernel(x_ref, s_ref, o_ref):
        x = x_ref[...]                  # (rtp, k*w1)  lane-dense
        s = s_ref[...]                  # (rtp, k*w2)  lane-dense
        pieces = []
        for j in range(k):              # static lane slices (zero-cost views)
            pieces.append(x[:, j * w1:(j + 1) * w1])
            pieces.append(s[:, j * w2:(j + 1) * w2])
        # Single wide store of the whole (rtp, k*(w1+w2)) tile.
        o_ref[...] = jnp.concatenate(pieces, axis=-1)

    return kernel


def _choose_row_tile(rows_p: int, per_row_bytes: int, sub: int,
                     target_bytes: int = 4 * 1024 * 1024) -> int:
    """Largest row tile ~target_bytes that tiles rows_p evenly (no ragged tail)."""
    rt = max(sub, target_bytes // max(per_row_bytes, 1))
    if rt >= rows_p:
        return rows_p                    # whole problem in one block
    if rows_p % sub != 0:
        return rows_p                    # full-extent block is always legal
    rt = max(sub, (rt // sub) * sub)     # keep a sublane multiple
    while rows_p % rt != 0:
        rt -= sub
    return rt


def side_concat_last_dim(x2d: jax.Array, side2d: jax.Array) -> jax.Array:
    """Concatenate two 2-D arrays along the last dim with a Pallas kernel.

    x2d: (R, W1), side2d: (R, W2) -> (R, W1 + W2)
    """
    R, W1 = x2d.shape
    R2, W2 = side2d.shape
    assert R == R2, "non-concat dims must match"
    assert x2d.dtype == side2d.dtype, "dtypes must match"

    dtype = x2d.dtype
    itemsize = jnp.dtype(dtype).itemsize
    sub = _sublane_multiple(itemsize)
    wsum = W1 + W2

    k = _pack_factor(W1, W2, R)
    rows_p = R // k                      # packed rows
    wp = k * wsum                        # packed output width

    # Free row-major reshapes (no data movement), done at the XLA level.
    x2 = x2d.reshape(rows_p, k * W1)
    s2 = side2d.reshape(rows_p, k * W2)

    # Lane-padded VMEM bytes per packed row (x block + side block + out block);
    # used to budget the row tile so double-buffered blocks stay well under the
    # default scoped VMEM limit on v5e / v6e / v7x.
    per_row_bytes = itemsize * (
        _ceil_to(k * W1, 128) + _ceil_to(k * W2, 128) + _ceil_to(wp, 128)
    )
    rtp = _choose_row_tile(rows_p, per_row_bytes, sub)
    grid = (rows_p // rtp,)

    out_packed = pl.pallas_call(
        _concat_last_kernel(W1, W2, k),
        out_shape=jax.ShapeDtypeStruct((rows_p, wp), dtype),
        grid_spec=pl.GridSpec(
            grid=grid,
            in_specs=[
                pl.BlockSpec((rtp, k * W1), lambda i: (i, 0)),
                pl.BlockSpec((rtp, k * W2), lambda i: (i, 0)),
            ],
            out_specs=pl.BlockSpec((rtp, wp), lambda i: (i, 0)),
        ),
        compiler_params=pltpu.CompilerParams(
            dimension_semantics=("parallel",),
        ),
    )(x2, s2)

    # (rows_p, k*(W1+W2)) and (R, W1+W2) are the same row-major buffer.
    return out_packed.reshape(R, wsum)


class HookBox:
    """Minimal stand-in for the PyTorch hookbox: holds a side tensor."""

    def __init__(self, value: jax.Array):
        self._value = value

    def get(self) -> jax.Array:
        return self._value


class SideConcat:
    """JAX/Pallas equivalent of the PyTorch SideConcat module."""

    def __init__(self, hookbox: HookBox, dim: int = -1):
        self.hookbox = hookbox
        self.dim = dim

    def __call__(self, x: jax.Array) -> jax.Array:
        side = self.hookbox.get()
        dim = self.dim if self.dim >= 0 else x.ndim + self.dim
        assert 0 <= dim < x.ndim
        # torch.cat requirement: all dims except `dim` must match.
        assert (x.shape[:dim] + x.shape[dim + 1:]
                == side.shape[:dim] + side.shape[dim + 1:])
        lead = x.shape[:dim]
        trail = x.shape[dim + 1:]
        R = math.prod(lead) if lead else 1
        T = math.prod(trail) if trail else 1
        # Flatten (dim, *trail) into the column axis: concat along `dim`
        # becomes a last-dim concat of 2-D arrays (row-major equivalence).
        x2d = x.reshape(R, x.shape[dim] * T)
        s2d = side.reshape(R, side.shape[dim] * T)
        out2d = side_concat_last_dim(x2d, s2d)
        out_shape = lead + (x.shape[dim] + side.shape[dim],) + trail
        return out2d.reshape(out_shape)


if __name__ == "__main__":
    key = jax.random.PRNGKey(0)
    kx, ks = jax.random.split(key)

    # NCHW inputs, small shapes.
    N, C, H, W = 2, 4, 16, 16
    W_side = 16

    x = jax.random.normal(kx, (N, C, H, W), dtype=jnp.float32)
    side = jax.random.normal(ks, (N, C, H, W_side), dtype=jnp.float32)

    module = SideConcat(HookBox(side), dim=-1)
    out = jax.block_until_ready(module(x))

    # Check against the plain-JAX reference of torch.cat(..., dim=-1).
    ref = jnp.concatenate([x, side], axis=-1)
    assert out.shape == (N, C, H, W + W_side)
    assert jnp.array_equal(out, ref)

    print("KERNEL_OK")
</pallas_src>

<mosaic_0001>
module attributes {stable_mosaic.version = 11 : i64} {
  func.func @kernel(%arg0: i32, %arg1: memref<32x64xf32, #tpu.memory_space<vmem>>, %arg2: memref<32x64xf32, #tpu.memory_space<vmem>>, %arg3: memref<32x128xf32, #tpu.memory_space<vmem>>) attributes {dimension_semantics = [#tpu.dimension_semantics<parallel>], iteration_bounds = array<i64: 1>, scalar_prefetch = 0 : i64, scratch_operands = 0 : i64, tpu.core_type = #tpu.core_type<tc>, window_params = [{transform_indices = @transform_0, window_bounds = array<i64: 32, 64>}, {transform_indices = @transform_1, window_bounds = array<i64: 32, 64>}, {transform_indices = @transform_2, window_bounds = array<i64: 32, 128>}]} {
    %c0 = arith.constant 0 : index
    %c0_0 = arith.constant 0 : index
    %0 = vector.load %arg1[%c0, %c0_0] : memref<32x64xf32, #tpu.memory_space<vmem>>, vector<32x64xf32>
    %c0_1 = arith.constant 0 : index
    %c0_2 = arith.constant 0 : index
    %1 = vector.load %arg2[%c0_1, %c0_2] : memref<32x64xf32, #tpu.memory_space<vmem>>, vector<32x64xf32>
    %2 = vector.extract_strided_slice %0 {offsets = [0, 0], sizes = [32, 16], strides = [1, 1]} : vector<32x64xf32> to vector<32x16xf32>
    %3 = vector.extract_strided_slice %1 {offsets = [0, 0], sizes = [32, 16], strides = [1, 1]} : vector<32x64xf32> to vector<32x16xf32>
    %4 = vector.extract_strided_slice %0 {offsets = [0, 16], sizes = [32, 16], strides = [1, 1]} : vector<32x64xf32> to vector<32x16xf32>
    %5 = vector.extract_strided_slice %1 {offsets = [0, 16], sizes = [32, 16], strides = [1, 1]} : vector<32x64xf32> to vector<32x16xf32>
    %6 = vector.extract_strided_slice %0 {offsets = [0, 32], sizes = [32, 16], strides = [1, 1]} : vector<32x64xf32> to vector<32x16xf32>
    %7 = vector.extract_strided_slice %1 {offsets = [0, 32], sizes = [32, 16], strides = [1, 1]} : vector<32x64xf32> to vector<32x16xf32>
    %8 = vector.extract_strided_slice %0 {offsets = [0, 48], sizes = [32, 16], strides = [1, 1]} : vector<32x64xf32> to vector<32x16xf32>
    %9 = vector.extract_strided_slice %1 {offsets = [0, 48], sizes = [32, 16], strides = [1, 1]} : vector<32x64xf32> to vector<32x16xf32>
    %10 = tpu.concatenate %2, %3, %4, %5, %6, %7, %8, %9 in 1 : vector<32x16xf32>, vector<32x16xf32>, vector<32x16xf32>, vector<32x16xf32>, vector<32x16xf32>, vector<32x16xf32>, vector<32x16xf32>, vector<32x16xf32> -> vector<32x128xf32>
    %c0_3 = arith.constant 0 : index
    %c0_4 = arith.constant 0 : index
    %11 = vector.load %arg3[%c0_3, %c0_4] : memref<32x128xf32, #tpu.memory_space<vmem>>, vector<32x128xf32>
    tpu.vector_store %arg3[%c0_3, %c0_4], %10 {strides = array<i32>} : memref<32x128xf32, #tpu.memory_space<vmem>>, vector<32x128xf32>,
    return
  }
  func.func @transform_0(%arg0: i32) -> (i32, i32) {
    %c0_i32 = arith.constant 0 : i32
    %c0_i32_0 = arith.constant 0 : i32
    return %arg0, %c0_i32 : i32, i32
  }
  func.func @transform_1(%arg0: i32) -> (i32, i32) {
    %c0_i32 = arith.constant 0 : i32
    %c0_i32_0 = arith.constant 0 : i32
    return %arg0, %c0_i32 : i32, i32
  }
  func.func @transform_2(%arg0: i32) -> (i32, i32) {
    %c0_i32 = arith.constant 0 : i32
    %c0_i32_0 = arith.constant 0 : i32
    return %arg0, %c0_i32 : i32, i32
  }
}

</mosaic_0001>

<bundles_post_ra>
// kernel: tpu_custom_call.1
= control target key start
LH: loop header
LB: loop body
LE: loop exit
PB: predicated region body
PF: predicated region fallthrough
CT: control target
= control target key end

     0   :  { %7 = vsyncpa [#allocation3], 0  ;;  %s387_s0 = inlined_call_operand.hbm [shape: f32[32,64], index: 0, kind: input, shape index: {}]   ;;  %s388_s1 = inlined_call_operand.hbm [shape: f32[32,64], index: 1, kind: input, shape index: {}]   ;;  %s389_s2 = inlined_call_operand.hbm [shape: f32[32,128], index: 2, kind: output, shape index: {}]  }
   0x1   :  { %8 = vsyncpa [#allocation6], 0 }
   0x2   :  { %9 = vsyncpa [#allocation4], 0  ;;  %s278_s9 = smov [#allocation2]   ;;  %s206_s13 = scalar_lea.hbm %s387_s0, 512 }
   0x3   :  { %s15_s10 = sshll.u32 %s278_s9, 4  ;;  %p207_p0 = scmp.ne.s32.totalorder %s387_s0, %s206_s13  ;;  %s16_s10 = int_to_ptr.vmem [resolvable:$true] %s15_s10 }
   0x4   :  { %p210_p1 = scmp.lt.u32.totalorder %s206_s13, %s387_s0 }
   0x6   :  { %p212_p2 = pnand %p210_p1, %p207_p0 }
   0x8   :  { %215 = shalt.err (!%p212_p2)
}
   0x9   :  { %s216_s18 = scalar_lea.vmem %s16_s10, 512  ;;  %p221_p4 = scmp.lt.s32.totalorder %s16_s10, %s16_s10 }
   0xa   :  { %p217_p3 = scmp.ne.s32.totalorder %s16_s10, %s216_s18  ;;  %p222_p5 = scmp.lt.s32.totalorder %s216_s18, %s216_s18 }
   0xc   :  { %p223_p6 = por %p222_p5, %p221_p4 }
   0xe   :  { %p224_p7 = pnand %p223_p6, %p217_p3 }
  0x10   :  { %227 = shalt.err (!%p224_p7)
}
  0x11   :  { %s279_s19 = smov 128   ;;  %s280_s20 = smov 8  }
  0x12   :  { %21 = dma.hbm_to_vmem [thread:$0]  %s387_s0, 512, %s16_s10, [#allocation3], %s279_s19, %s279_s19, %s280_s20  }
  0x13   :  { %s281_s23 = smov [#allocation5]   ;;  %s228_s27 = scalar_lea.hbm %s388_s1, 512 }
  0x14   :  { %s27_s24 = sshll.u32 %s281_s23, 4  ;;  %p229_p8 = scmp.ne.s32.totalorder %s388_s1, %s228_s27  ;;  %s28_s24 = int_to_ptr.vmem [resolvable:$true] %s27_s24 }
  0x15   :  { %p232_p9 = scmp.lt.u32.totalorder %s228_s27, %s388_s1 }
  0x17   :  { %p234_p10 = pnand %p232_p9, %p229_p8 }
  0x19   :  { %237 = shalt.err (!%p234_p10)
}
  0x1a   :  { %s238_s4 = scalar_lea.vmem %s28_s24, 512  ;;  %p243_p12 = scmp.lt.s32.totalorder %s28_s24, %s28_s24 }
  0x1b   :  { %p239_p11 = scmp.ne.s32.totalorder %s28_s24, %s238_s4  ;;  %p244_p13 = scmp.lt.s32.totalorder %s238_s4, %s238_s4 }
  0x1d   :  { %p245_p0 = por %p244_p13, %p243_p12 }
  0x1f   :  { %p246_p1 = pnand %p245_p0, %p239_p11 }
  0x21   :  { %249 = shalt.err (!%p246_p1)
}
  0x22   :  { %33 = dma.hbm_to_vmem [thread:$0]  %s388_s1, 512, %s28_s24, [#allocation6], %s279_s19, %s279_s19, %s280_s20  }
  0x23   :  { %272 = dma.done.wait [#allocation3], 512  }
  0x24   :  { %273 = vsyncadd [#allocation3], 4294966784 }
  0x25   :  { %274 = dma.done.wait [#allocation6], 512  }
  0x26   :  { %275 = vsyncadd [#allocation6], 4294966784  ;;  %v46_v0 = vld [vmem:[#allocation5 + $0x10] sm:$0xff]  ;;  %v44_v1 = vld [vmem:[#allocation5] sm:$0xff]  ;;  %s282_s6 = smov 16   ;;  %s283_s1 = smov 32  }
  0x27   :  { %56 = vrot.lane.b32.xlu1 %v46_v0, %s282_s6  ;;  %52 = vrot.lane.b32.xlu0 %v44_v1, %s282_s6  ;;  %v47_v2 = vld [vmem:[#allocation5 + $0x18] sm:$0xff]  ;;  %v45_v3 = vld [vmem:[#allocation5 + $0x8] sm:$0xff]  ;;  %v40_v5 = vld [vmem:[#allocation2] sm:$0xff]  ;;  %s284_s7 = smov 48   ;;  %s285_s8 = smov 64   ;;  %vm140_vm0 = vcmask 130048  }
  0x28   :  { %v41_v4 = vld [vmem:[#allocation2 + $0x8] sm:$0xff]  ;;  %v332_v6 = vld [vmem:[#allocation2 + $0x18] sm:$0xff]  ;;  %v334_v7 = vld [vmem:[#allocation2 + $0x10] sm:$0xff]  ;;  %vm145_vm1 = vcmask 261120   ;;  %vm150_vm2 = vcmask 392192   ;;  %vm155_vm3 = vcmask 523264  }
  0x29   :  { %vm160_vm4 = vcmask 654336   ;;  %vm165_vm5 = vcmask 785408   ;;  %vm170_vm6 = vcmask 916480   ;;  %s286_s9 = smov [#allocation7]  }
  0x2a   :  { %s184_s10 = sshll.u32 %s286_s9, 4  ;;  %s185_s10 = int_to_ptr.vmem [resolvable:$true] %s184_s10 }
  0x2b   :  { %58 = vrot.lane.b32.xlu1 %v47_v2, %s282_s6  ;;  %54 = vrot.lane.b32.xlu0 %v45_v3, %s282_s6  ;;  %s250_s11 = scalar_lea.vmem %s185_s10, 512  ;;  %p255_p3 = scmp.lt.s32.totalorder %s185_s10, %s185_s10 }
  0x2c   :  { %p251_p2 = scmp.ne.s32.totalorder %s185_s10, %s250_s11  ;;  %p256_p4 = scmp.lt.s32.totalorder %s250_s11, %s250_s11 }
  0x2e   :  { %p257_p5 = por %p256_p4, %p255_p3 }
  0x2f   :  { %70 = vrot.lane.b32.xlu1 %v41_v4, %s282_s6  ;;  %68 = vrot.lane.b32.xlu0 %v40_v5, %s282_s6 }
  0x30   :  { %p258_p6 = pnand %p257_p5, %p251_p2 }
  0x33   :  { %74 = vrot.lane.b32.xlu1 %v332_v6, %s282_s6  ;;  %72 = vrot.lane.b32.xlu0 %v334_v7, %s282_s6 }
  0x37   :  { %82 = vrot.lane.b32.xlu1 %v45_v3, %s283_s1  ;;  %80 = vrot.lane.b32.xlu0 %v44_v1, %s283_s1 }
  0x3b   :  { %86 = vrot.lane.b32.xlu1 %v47_v2, %s283_s1  ;;  %84 = vrot.lane.b32.xlu0 %v46_v0, %s283_s1 }
  0x3f   :  { %94 = vrot.lane.b32.xlu1 %v41_v4, %s283_s1  ;;  %92 = vrot.lane.b32.xlu0 %v40_v5, %s283_s1 }
  0x43   :  { %98 = vrot.lane.b32.xlu1 %v332_v6, %s283_s1  ;;  %96 = vrot.lane.b32.xlu0 %v334_v7, %s283_s1 }
  0x47   :  { %106 = vrot.lane.b32.xlu1 %v45_v3, %s284_s7  ;;  %104 = vrot.lane.b32.xlu0 %v44_v1, %s284_s7 }
  0x4b   :  { %110 = vrot.lane.b32.xlu1 %v47_v2, %s284_s7  ;;  %108 = vrot.lane.b32.xlu0 %v46_v0, %s284_s7 }
  0x4f   :  { %118 = vrot.lane.b32.xlu1 %v41_v4, %s284_s7  ;;  %116 = vrot.lane.b32.xlu0 %v40_v5, %s284_s7 }
  0x53   :  { %122 = vrot.lane.b32.xlu1 %v332_v6, %s284_s7  ;;  %120 = vrot.lane.b32.xlu0 %v334_v7, %s284_s7 }
  0x57   :  { %130 = vrot.lane.b32.xlu1 %v45_v3, %s285_s8  ;;  %128 = vrot.lane.b32.xlu0 %v44_v1, %s285_s8 }
  0x5b   :  { %134 = vrot.lane.b32.xlu1 %v47_v2, %s285_s8  ;;  %132 = vrot.lane.b32.xlu0 %v46_v0, %s285_s8 }
  0x99   :  { %v57_v8 = vpop.permute.xlu1 %56  ;;  %v53_v9 = vpop.permute.xlu0 %52 }
  0x9a   :  { %v141_v30 = vsel %vm140_vm0, %v40_v5, %v53_v9  ;;  %v143_v40 = vsel %vm140_vm0, %v334_v7, %v57_v8 }
  0x9d   :  { %v59_v10 = vpop.permute.xlu1 %58  ;;  %v55_v11 = vpop.permute.xlu0 %54 }
  0x9e   :  { %v142_v31 = vsel %vm140_vm0, %v41_v4, %v55_v11  ;;  %v144_v41 = vsel %vm140_vm0, %v332_v6, %v59_v10 }
  0xa1   :  { %v71_v12 = vpop.permute.xlu1 %70  ;;  %v69_v13 = vpop.permute.xlu0 %68 }
  0xa2   :  { %v147_v32 = vsel %vm145_vm1, %v142_v31, %v71_v12  ;;  %v146_v33 = vsel %vm145_vm1, %v141_v30, %v69_v13 }
  0xa5   :  { %v75_v14 = vpop.permute.xlu1 %74  ;;  %v73_v15 = vpop.permute.xlu0 %72 }
  0xa6   :  { %v149_v44 = vsel %vm145_vm1, %v144_v41, %v75_v14  ;;  %v148_v45 = vsel %vm145_vm1, %v143_v40, %v73_v15 }
  0xa9   :  { %v83_v16 = vpop.permute.xlu1 %82  ;;  %v81_v17 = vpop.permute.xlu0 %80 }
  0xaa   :  { %v152_v36 = vsel %vm150_vm2, %v147_v32, %v83_v16  ;;  %v151_v37 = vsel %vm150_vm2, %v146_v33, %v81_v17 }
  0xad   :  { %v87_v18 = vpop.permute.xlu1 %86  ;;  %v85_v19 = vpop.permute.xlu0 %84 }
  0xae   :  { %v154_v50 = vsel %vm150_vm2, %v149_v44, %v87_v18  ;;  %v153_v51 = vsel %vm150_vm2, %v148_v45, %v85_v19 }
  0xb1   :  { %v95_v20 = vpop.permute.xlu1 %94  ;;  %v93_v21 = vpop.permute.xlu0 %92 }
  0xb2   :  { %v157_v38 = vsel %vm155_vm3, %v152_v36, %v95_v20  ;;  %v156_v39 = vsel %vm155_vm3, %v151_v37, %v93_v21 }
  0xb5   :  { %v99_v22 = vpop.permute.xlu1 %98  ;;  %v97_v23 = vpop.permute.xlu0 %96 }
  0xb6   :  { %v159_v54 = vsel %vm155_vm3, %v154_v50, %v99_v22  ;;  %v158_v55 = vsel %vm155_vm3, %v153_v51, %v97_v23 }
  0xb9   :  { %v107_v24 = vpop.permute.xlu1 %106  ;;  %v105_v25 = vpop.permute.xlu0 %104 }
  0xba   :  { %v162_v42 = vsel %vm160_vm4, %v157_v38, %v107_v24  ;;  %v161_v43 = vsel %vm160_vm4, %v156_v39, %v105_v25 }
  0xbd   :  { %v111_v26 = vpop.permute.xlu1 %110  ;;  %v109_v27 = vpop.permute.xlu0 %108 }
  0xbe   :  { %v164_v56 = vsel %vm160_vm4, %v159_v54, %v111_v26  ;;  %v163_v57 = vsel %vm160_vm4, %v158_v55, %v109_v27 }
  0xc1   :  { %v119_v28 = vpop.permute.xlu1 %118  ;;  %v117_v29 = vpop.permute.xlu0 %116 }
  0xc2   :  { %v167_v46 = vsel %vm165_vm5, %v162_v42, %v119_v28  ;;  %v166_v47 = vsel %vm165_vm5, %v161_v43, %v117_v29 }
  0xc5   :  { %v123_v34 = vpop.permute.xlu1 %122  ;;  %v121_v35 = vpop.permute.xlu0 %120 }
  0xc6   :  { %v169_v58 = vsel %vm165_vm5, %v164_v56, %v123_v34  ;;  %v168_v59 = vsel %vm165_vm5, %v163_v57, %v121_v35 }
  0xc9   :  { %v131_v48 = vpop.permute.xlu1 %130  ;;  %v129_v49 = vpop.permute.xlu0 %128 }
  0xca   :  { %v172_v52 = vsel %vm170_vm6, %v167_v46, %v131_v48  ;;  %v171_v53 = vsel %vm170_vm6, %v166_v47, %v129_v49 }
  0xcb   :  { %176 = vst [vmem:[#allocation7 + $0x8] sm:$0xff] %v172_v52  ;;  %175 = vst [vmem:[#allocation7] sm:$0xff] %v171_v53 }
  0xcd   :  { %v135_v60 = vpop.permute.xlu1 %134  ;;  %v133_v61 = vpop.permute.xlu0 %132 }
  0xce   :  { %v174_v62 = vsel %vm170_vm6, %v169_v58, %v135_v60  ;;  %v173_v63 = vsel %vm170_vm6, %v168_v59, %v133_v61 }
  0xcf   :  { %178 = vst [vmem:[#allocation7 + $0x18] sm:$0xff] %v174_v62  ;;  %177 = vst [vmem:[#allocation7 + $0x10] sm:$0xff] %v173_v63 }
  0xd0   :  { %261 = shalt.err (!%p258_p6)
}
  0xd1   :  { %s262_s14 = scalar_lea.hbm %s389_s2, 512 }
  0xd2   :  { %p263_p7 = scmp.ne.s32.totalorder %s389_s2, %s262_s14  ;;  %p266_p8 = scmp.lt.u32.totalorder %s262_s14, %s389_s2 }
  0xd4   :  { %p268_p9 = pnand %p266_p8, %p263_p7 }
  0xd6   :  { %271 = shalt.err (!%p268_p9)
}
  0xd7   :  { %190 = dma.vmem_to_hbm [thread:$0]  %s185_s10, 512, %s389_s2, [#allocation4], %s279_s19, %s279_s19, %s280_s20  }
  0xd8   :  { %276 = dma.done.wait [#allocation4], 512  }
  0xd9   :  { %277 = vsyncadd [#allocation4], 4294966784 }
  0xda   :  { %194 = vsyncpa [#allocation3], 1 }
  0xdb   :  { %195 = vsyncpa [#allocation6], 1 }
  0xdc   :  { %196 = vsyncpa [#allocation4], 1 }

</bundles_post_ra>
